<compile_context>
chip_gen: v5e
topology: v5e:2x2
jax: 0.10.0
libtpu: 0.0.40
codegen_flags: <defaults>
</compile_context>

<pallas_src>
import functools
import math

import jax
import jax.numpy as jnp
from jax.experimental import pallas as pl
from jax.experimental.pallas import tpu as pltpu


# --------------------------------------------------------------------------
# helpers
# --------------------------------------------------------------------------
def _round_up(x, m):
    return (x + m - 1) // m * m


def square_distance(src, dst):
    # src (B,N,3), dst (B,M,3) -> (B,N,M)
    return jnp.sum((src[:, :, None, :] - dst[:, None, :, :]) ** 2, axis=-1)


def index_points(points, idx):
    # points (B,S,C), idx (B,...) int -> (B,...,C)
    B = points.shape[0]
    batch = jnp.arange(B).reshape((B,) + (1,) * (idx.ndim - 1))
    return points[batch, idx]


# --------------------------------------------------------------------------
# Pallas kernel: fused SharedMLP  (chained 1x1-conv(+folded BN scale) + bias
# + ReLU).  refs = (w0, b0, w1, b1, ..., o_ref).
# --------------------------------------------------------------------------
def _fused_mlp_kernel(x_ref, *refs, num_layers):
    """x_ref: (tm, Cp0) bf16 tile.  w_l: (Cp_in, Cp_out) bf16 (BN scale folded
    in).  b_l: (1, Cp_out) f32 folded BN bias.  o_ref: (tm, CpL) bf16."""
    o_ref = refs[-1]
    h = x_ref[...]                                               # bf16
    for l in range(num_layers):
        w = refs[2 * l][...]
        b = refs[2 * l + 1][...]
        y = jnp.dot(h, w, preferred_element_type=jnp.float32)    # MXU, f32 acc
        y = jnp.maximum(y + b, 0.0)                              # bias + ReLU
        h = y.astype(jnp.bfloat16) if l < num_layers - 1 else y
    o_ref[...] = h.astype(o_ref.dtype)


def shared_mlp_fused(x, packed_layers, out_channels,
                     tm_target=512, vmem_limit_bytes=48 << 20):
    """x: (M, Cp0) bf16 channel-padded activations -> (M, out_channels) bf16.

    packed_layers: list of (w_bf16[Cp_in,Cp_out] with BN scale folded in,
                            bias_f32[1,Cp_out]) pre-padded at build time.
    """
    M, Cp0 = x.shape
    assert Cp0 == packed_layers[0][0].shape[0], (Cp0, packed_layers[0][0].shape)
    CpL = packed_layers[-1][0].shape[1]

    # Resident (single-buffered) weight/bias bytes.
    resident = sum(int(w.size) * 2 + int(b.size) * 4 for (w, b) in packed_layers)
    max_cp = max(max(w.shape) for (w, _) in packed_layers)

    # Tile sizing: pick tm first (multiple of 256, biggest that fits the VMEM
    # budget), then derive the grid.  On 1-TC chips (v5e/v6e) fewer, larger
    # blocks win; on v7x ("parallel" grid axis) an even block count shards
    # evenly across the 2 TensorCores when M is large enough.
    tm = min(_round_up(tm_target, 256), _round_up(M, 256))

    def _step_bytes(t):
        # double-buffered bf16 in/out activation tiles + resident weights
        # + rough f32 live-intermediate estimate.
        return (2 * t * Cp0 * 2) + (2 * t * CpL * 2) + resident + (2 * t * max_cp * 4)

    while tm > 256 and _step_bytes(tm) > (vmem_limit_bytes - (8 << 20)):
        tm -= 256

    n_blocks = pl.cdiv(M, tm)
    Mp = tm * n_blocks
    xp = x if Mp == M else jnp.pad(x, ((0, Mp - M), (0, 0)))     # bf16 row pad

    in_specs = [pl.BlockSpec((tm, Cp0), lambda i: (i, 0))]
    args = [xp]
    for (wp, bp) in packed_layers:
        cpi, cpo = wp.shape
        # Grid-invariant operands: single-buffered, VMEM-resident.
        in_specs += [
            pl.BlockSpec((cpi, cpo), lambda i: (0, 0),
                         pipeline_mode=pl.Buffered(1)),
            pl.BlockSpec((1, cpo), lambda i: (0, 0),
                         pipeline_mode=pl.Buffered(1)),
        ]
        args += [wp, bp]

    out = pl.pallas_call(
        functools.partial(_fused_mlp_kernel, num_layers=len(packed_layers)),
        out_shape=jax.ShapeDtypeStruct((Mp, CpL), jnp.bfloat16),
        grid_spec=pltpu.PrefetchScalarGridSpec(
            num_scalar_prefetch=0,
            grid=(n_blocks,),
            in_specs=in_specs,
            out_specs=pl.BlockSpec((tm, CpL), lambda i: (i, 0)),
        ),
        compiler_params=pltpu.CompilerParams(
            dimension_semantics=("parallel",),
            vmem_limit_bytes=vmem_limit_bytes,
        ),
    )(*args)
    return out[:M, :out_channels]


# --------------------------------------------------------------------------
# Parameter init (matches torch: kaiming_normal_ conv, no bias, BN init)
# --------------------------------------------------------------------------
def init_fp_module(key, mlp, bn_eps=1e-5):
    """Raw f32 parameters for SharedMLP(mlp, bn=True)."""
    layers = []
    for i in range(len(mlp) - 1):
        key, sub = jax.random.split(key)
        cin, cout = mlp[i], mlp[i + 1]
        std = math.sqrt(2.0 / cin)  # kaiming_normal_, fan_in, 1x1 kernel
        w = jax.random.normal(sub, (cin, cout), jnp.float32) * std
        layers.append(dict(
            w=w,
            gamma=jnp.ones((cout,), jnp.float32),
            beta=jnp.zeros((cout,), jnp.float32),
            mean=jnp.zeros((cout,), jnp.float32),
            var=jnp.ones((cout,), jnp.float32),
            eps=bn_eps,
        ))
    return layers


def pack_fp_params(layers):
    """Fold BN scale into the weights and BN shift into a bias; pad to
    128-multiples; cast weights to bf16.  Done ONCE at build time."""
    packed = []
    for L in layers:
        scale = L["gamma"] / jnp.sqrt(L["var"] + L["eps"])
        bias = L["beta"] - L["mean"] * scale
        w = L["w"] * scale[None, :]                  # fold scale (f32) into W
        cin, cout = w.shape
        cpi, cpo = _round_up(cin, 128), _round_up(cout, 128)
        wp = jnp.pad(w, ((0, cpi - cin), (0, cpo - cout))).astype(jnp.bfloat16)
        bp = jnp.pad(bias, (0, cpo - cout)).reshape(1, cpo).astype(jnp.float32)
        packed.append((wp, bp))
    return packed


# --------------------------------------------------------------------------
# PointnetFPModule forward
# --------------------------------------------------------------------------
def _fp_features(unknown, known, unknow_feats, known_feats,
                 pad_to=None, out_dtype=jnp.float32):
    """3-NN interpolation + concat (plain-JAX glue, channels-last).

    If pad_to is given, the concat is emitted channel-padded to `pad_to` and
    cast to `out_dtype` in the same fusion (no separate pad/cast pass)."""
    B, N, _ = unknown.shape
    _, S, _ = known.shape
    kf = jnp.transpose(known_feats, (0, 2, 1))                   # (B,S,C2)
    if S == 1:
        interpolated = jnp.broadcast_to(kf, (B, N, kf.shape[-1]))
    else:
        dists = square_distance(unknown, known)                  # (B,N,S)
        k = min(3, S)                                            # tolerate S==2
        neg_dk, idx = jax.lax.top_k(-dists, k)                   # k smallest
        dk = -neg_dk
        weight = 1.0 / (dk + 1e-8)
        weight = weight / jnp.sum(weight, axis=-1, keepdims=True)
        interpolated = jnp.sum(index_points(kf, idx) * weight[..., None],
                               axis=2)                           # (B,N,C2)
    parts = []
    if unknow_feats is not None:
        parts.append(jnp.transpose(unknow_feats, (0, 2, 1)))     # (B,N,C1)
    parts.append(interpolated)
    C = sum(p.shape[-1] for p in parts)
    parts = [p.astype(out_dtype) for p in parts]
    if pad_to is not None and pad_to > C:
        parts.append(jnp.zeros((B, N, pad_to - C), out_dtype))
    return jnp.concatenate(parts, axis=-1)                       # (B,N,C|pad_to)


def pointnet_fp_forward(packed_mlp, config, unknown, known,
                        unknow_feats, known_feats):
    B, N, _ = unknown.shape
    Cp0 = packed_mlp[0][0].shape[0]
    # Channel-padded bf16 concat straight out of the interpolation fusion.
    feats = _fp_features(unknown, known, unknow_feats, known_feats,
                         pad_to=Cp0, out_dtype=jnp.bfloat16)     # (B,N,Cp0)
    x = feats.reshape(B * N, Cp0)
    y = shared_mlp_fused(x, packed_mlp, config["mlp"][-1],
                         tm_target=config.get("tm", 512),
                         vmem_limit_bytes=config.get("vmem", 48 << 20))
    # single NCHW-style transpose + f32 cast at the module boundary
    return jnp.transpose(y.reshape(B, N, config["mlp"][-1]),
                         (0, 2, 1)).astype(jnp.float32)          # (B,mlp[-1],N)


def pointnet_fp_reference(raw_layers, config, unknown, known,
                          unknow_feats, known_feats):
    """Pure-JAX f32 reference of the same forward (for validation)."""
    h = _fp_features(unknown, known, unknow_feats, known_feats)  # (B,N,C) f32
    for L in raw_layers:
        scale = L["gamma"] / jnp.sqrt(L["var"] + L["eps"])
        bias = L["beta"] - L["mean"] * scale
        h = jnp.maximum(jnp.dot(h, L["w"]) * scale + bias, 0.0)
    return jnp.transpose(h, (0, 2, 1))


# --------------------------------------------------------------------------
if __name__ == "__main__":
    key = jax.random.PRNGKey(0)
    k1, k2, k3, k4, kp = jax.random.split(key, 5)

    B, N, S = 2, 64, 16          # n unknown points, m known points
    C1, C2 = 32, 96              # unknow_feats / known_feats channels
    MLP = [C1 + C2, 128, 64]     # SharedMLP channel spec
    config = dict(mlp=MLP, tm=512)

    unknown = jax.random.uniform(k1, (B, N, 3), jnp.float32, minval=-1.0, maxval=1.0)
    known = jax.random.uniform(k2, (B, S, 3), jnp.float32, minval=-1.0, maxval=1.0)
    unknow_feats = jax.random.normal(k3, (B, C1, N), jnp.float32)
    known_feats = jax.random.normal(k4, (B, C2, S), jnp.float32)

    raw_layers = init_fp_module(kp, MLP)
    packed = pack_fp_params(raw_layers)

    fwd = jax.jit(lambda p, u, k, uf, kf:
                  pointnet_fp_forward(p, config, u, k, uf, kf))
    out = fwd(packed, unknown, known, unknow_feats, known_feats)
    jax.block_until_ready(out)

    assert out.shape == (B, MLP[-1], N), out.shape
    assert out.dtype == jnp.float32
    assert bool(jnp.all(jnp.isfinite(out)))

    # validate against f32 pure-JAX reference (bf16 operands/output -> loose tol)
    ref = pointnet_fp_reference(raw_layers, config, unknown, known,
                                unknow_feats, known_feats)
    err = float(jnp.max(jnp.abs(out - ref)))
    scale = float(jnp.max(jnp.abs(ref))) + 1e-6
    assert err <= 0.05 * scale, (err, scale)

    print("KERNEL_OK")
</pallas_src>

<mosaic_0001>
module attributes {stable_mosaic.version = 11 : i64} {
  func.func @_fused_mlp_kernel(%arg0: i32, %arg1: memref<256x128xbf16, #tpu.memory_space<vmem>>, %arg2: memref<128x128xbf16, #tpu.memory_space<vmem>>, %arg3: memref<1x128xf32, #tpu.memory_space<vmem>>, %arg4: memref<128x128xbf16, #tpu.memory_space<vmem>>, %arg5: memref<1x128xf32, #tpu.memory_space<vmem>>, %arg6: memref<256x128xbf16, #tpu.memory_space<vmem>>) attributes {dimension_semantics = [#tpu.dimension_semantics<parallel>], iteration_bounds = array<i64: 1>, scalar_prefetch = 0 : i64, scratch_operands = 0 : i64, tpu.core_type = #tpu.core_type<tc>, window_params = [{transform_indices = @transform_0, window_bounds = array<i64: 256, 128>}, {pipeline_mode = #tpu.pipeline_mode<synchronous>, transform_indices = @transform_1, window_bounds = array<i64: 128, 128>}, {pipeline_mode = #tpu.pipeline_mode<synchronous>, transform_indices = @transform_2, window_bounds = array<i64: 1, 128>}, {pipeline_mode = #tpu.pipeline_mode<synchronous>, transform_indices = @transform_3, window_bounds = array<i64: 128, 128>}, {pipeline_mode = #tpu.pipeline_mode<synchronous>, transform_indices = @transform_4, window_bounds = array<i64: 1, 128>}, {transform_indices = @transform_5, window_bounds = array<i64: 256, 128>}]} {
    %c0 = arith.constant 0 : index
    %c0_0 = arith.constant 0 : index
    %0 = vector.load %arg1[%c0, %c0_0] : memref<256x128xbf16, #tpu.memory_space<vmem>>, vector<256x128xbf16>
    %c0_1 = arith.constant 0 : index
    %c0_2 = arith.constant 0 : index
    %1 = vector.load %arg2[%c0_1, %c0_2] : memref<128x128xbf16, #tpu.memory_space<vmem>>, vector<128x128xbf16>
    %c0_3 = arith.constant 0 : index
    %c0_4 = arith.constant 0 : index
    %2 = vector.load %arg3[%c0_3, %c0_4] : memref<1x128xf32, #tpu.memory_space<vmem>>, vector<1x128xf32>
    %cst = arith.constant dense<0.000000e+00> : vector<256x128xf32>
    %3 = tpu.matmul %0, %1, %cst {dimension_numbers = #tpu.dot_dimension_numbers<[1], [0], [0], [1], [0, 0, 1, 1], [], []>} : vector<256x128xbf16>, vector<128x128xbf16>, vector<256x128xf32> -> vector<256x128xf32>
    %4 = vector.broadcast %2 : vector<1x128xf32> to vector<256x128xf32>
    %5 = arith.addf %3, %4 : vector<256x128xf32>
    %cst_5 = arith.constant 0.000000e+00 : f32
    %6 = vector.broadcast %cst_5 : f32 to vector<256x128xf32>
    %7 = arith.maximumf %5, %6 : vector<256x128xf32>
    %8 = arith.truncf %7 : vector<256x128xf32> to vector<256x128xbf16>
    %c0_6 = arith.constant 0 : index
    %c0_7 = arith.constant 0 : index
    %9 = vector.load %arg4[%c0_6, %c0_7] : memref<128x128xbf16, #tpu.memory_space<vmem>>, vector<128x128xbf16>
    %c0_8 = arith.constant 0 : index
    %c0_9 = arith.constant 0 : index
    %10 = vector.load %arg5[%c0_8, %c0_9] : memref<1x128xf32, #tpu.memory_space<vmem>>, vector<1x128xf32>
    %cst_10 = arith.constant dense<0.000000e+00> : vector<256x128xf32>
    %11 = tpu.matmul %8, %9, %cst_10 {dimension_numbers = #tpu.dot_dimension_numbers<[1], [0], [0], [1], [0, 0, 1, 1], [], []>} : vector<256x128xbf16>, vector<128x128xbf16>, vector<256x128xf32> -> vector<256x128xf32>
    %12 = vector.broadcast %10 : vector<1x128xf32> to vector<256x128xf32>
    %13 = arith.addf %11, %12 : vector<256x128xf32>
    %cst_11 = arith.constant 0.000000e+00 : f32
    %14 = vector.broadcast %cst_11 : f32 to vector<256x128xf32>
    %15 = arith.maximumf %13, %14 : vector<256x128xf32>
    %16 = arith.truncf %15 : vector<256x128xf32> to vector<256x128xbf16>
    %c0_12 = arith.constant 0 : index
    %c0_13 = arith.constant 0 : index
    %17 = vector.load %arg6[%c0_12, %c0_13] : memref<256x128xbf16, #tpu.memory_space<vmem>>, vector<256x128xbf16>
    tpu.vector_store %arg6[%c0_12, %c0_13], %16 {strides = array<i32>} : memref<256x128xbf16, #tpu.memory_space<vmem>>, vector<256x128xbf16>,
    return
  }
  func.func @transform_0(%arg0: i32) -> (i32, i32) {
    %c0_i32 = arith.constant 0 : i32
    %c0_i32_0 = arith.constant 0 : i32
    return %arg0, %c0_i32 : i32, i32
  }
  func.func @transform_1(%arg0: i32) -> (i32, i32) {
    %c0_i32 = arith.constant 0 : i32
    %c0_i32_0 = arith.constant 0 : i32
    %c0_i32_1 = arith.constant 0 : i32
    return %c0_i32, %c0_i32_0 : i32, i32
  }
  func.func @transform_2(%arg0: i32) -> (i32, i32) {
    %c0_i32 = arith.constant 0 : i32
    %c0_i32_0 = arith.constant 0 : i32
    %c0_i32_1 = arith.constant 0 : i32
    return %c0_i32, %c0_i32_0 : i32, i32
  }
  func.func @transform_3(%arg0: i32) -> (i32, i32) {
    %c0_i32 = arith.constant 0 : i32
    %c0_i32_0 = arith.constant 0 : i32
    %c0_i32_1 = arith.constant 0 : i32
    return %c0_i32, %c0_i32_0 : i32, i32
  }
  func.func @transform_4(%arg0: i32) -> (i32, i32) {
    %c0_i32 = arith.constant 0 : i32
    %c0_i32_0 = arith.constant 0 : i32
    %c0_i32_1 = arith.constant 0 : i32
    return %c0_i32, %c0_i32_0 : i32, i32
  }
  func.func @transform_5(%arg0: i32) -> (i32, i32) {
    %c0_i32 = arith.constant 0 : i32
    %c0_i32_0 = arith.constant 0 : i32
    return %arg0, %c0_i32 : i32, i32
  }
}

</mosaic_0001>

<bundles_post_ra>
// kernel: neg.2
= control target key start
LH: loop header
LB: loop body
LE: loop exit
PB: predicated region body
PF: predicated region fallthrough
CT: control target
= control target key end

     0   :  { %s72_s0 = inlined_call_operand.vmem [shape: f32[2,64,16], index: 0, kind: input, shape index: {}]   ;;  %s73_s1 = inlined_call_operand.vmem [shape: f32[2,64,16], index: 1, kind: output, shape index: {}]  }
   0x1   :  { %v2_v0 = vld [vmem:[%s72_s0] sm:$0xff]  ;;  %v32_v1 = vld [vmem:[%s72_s0 + $0x10] sm:$0xff]  ;;  %v34_v2 = vld [vmem:[%s72_s0 + $0x8] sm:$0xff] }
   0x2   :  { %v5_v3 = vxor.u32 2147483648, %v2_v0  ;;  %v12_v4 = vxor.u32 2147483648, %v32_v1  ;;  %v20_v5 = vxor.u32 2147483648, %v34_v2  ;;  %v36_v6 = vld [vmem:[%s72_s0 + $0x18] sm:$0xff] }
   0x3   :  { %v28_v7 = vxor.u32 2147483648, %v36_v6 }
   0x4   :  { %7 = vst [vmem:[%s73_s1] sm:$0xff] %v5_v3 }
   0x5   :  { %33 = vst [vmem:[%s73_s1 + $0x10] sm:$0xff] %v12_v4 }
   0x6   :  { %35 = vst [vmem:[%s73_s1 + $0x8] sm:$0xff] %v20_v5 }
   0x7   :  { %37 = vst [vmem:[%s73_s1 + $0x18] sm:$0xff] %v28_v7 }

// kernel: _lambda_.1
= control target key start
LH: loop header
LB: loop body
LE: loop exit
PB: predicated region body
PF: predicated region fallthrough
CT: control target
= control target key end

     0   :  { %s1131_s1 = inlined_call_operand.vmem [shape: bf16[128,128], index: 1, kind: input, shape index: {}]   ;;  %s1132_s2 = inlined_call_operand.vmem [shape: f32[1,128], index: 2, kind: input, shape index: {}]   ;;  %s1133_s0 = inlined_call_operand.vmem [shape: bf16[256,128], index: 0, kind: input, shape index: {}]   ;;  %s1134_s3 = inlined_call_operand.vmem [shape: bf16[128,128], index: 3, kind: input, shape index: {}]   ;;  %s1135_s4 = inlined_call_operand.vmem [shape: f32[1,128], index: 4, kind: input, shape index: {}]   ;;  %s1136_s5 = inlined_call_operand.vmem [shape: bf16[256,128], index: 5, kind: output, shape index: {}]  }
   0x1   :  { %v761_v0 = vld [vmem:[%s1131_s1 + $0x38] sm:$0xff]  ;;  %v760_v1 = vld [vmem:[%s1131_s1 + $0x30] sm:$0xff]  ;;  %v759_v2 = vld [vmem:[%s1131_s1 + $0x28] sm:$0xff] }
   0x2   :  { %216 = vmatpush.bf16.msra.mxu0 %v761_v0  ;;  %865 = vmatpush.bf16.msra.mxu2 %v761_v0  ;;  %v758_v3 = vld [vmem:[%s1131_s1 + $0x20] sm:$0xff]  ;;  %v757_v4 = vld [vmem:[%s1131_s1 + $0x18] sm:$0xff]  ;;  %v756_v5 = vld [vmem:[%s1131_s1 + $0x10] sm:$0xff] }
   0x3   :  { %v755_v6 = vld [vmem:[%s1131_s1 + $0x8] sm:$0xff]  ;;  %v754_v7 = vld [vmem:[%s1131_s1] sm:$0xff]  ;;  %v740_v12 = vld [vmem:[%s1133_s0 + $0x10] sm:$0xff] }
   0x4   :  { %v738_v8 = vld [vmem:[%s1133_s0] sm:$0xff]  ;;  %v739_v10 = vld [vmem:[%s1133_s0 + $0x8] sm:$0xff]  ;;  %v748_v13 = vld [vmem:[%s1133_s0 + $0x50] sm:$0xff] }
   0x5   :  { %v746_v9 = vld [vmem:[%s1133_s0 + $0x40] sm:$0xff]  ;;  %v747_v11 = vld [vmem:[%s1133_s0 + $0x48] sm:$0xff]  ;;  %v741_v14 = vld [vmem:[%s1133_s0 + $0x18] sm:$0xff] }
   0x6   :  { %217 = vmatpush.bf16.msra.mxu0 %v760_v1  ;;  %866 = vmatpush.bf16.msra.mxu2 %v760_v1  ;;  %v749_v15 = vld [vmem:[%s1133_s0 + $0x58] sm:$0xff]  ;;  %v742_v16 = vld [vmem:[%s1133_s0 + $0x20] sm:$0xff]  ;;  %v743_v19 = vld [vmem:[%s1133_s0 + $0x28] sm:$0xff] }
   0x7   :  { %v750_v17 = vld [vmem:[%s1133_s0 + $0x60] sm:$0xff]  ;;  %v769_v18 = vld [vmem:[%s1134_s3 + $0x38] sm:$0xff]  ;;  %v751_v20 = vld [vmem:[%s1133_s0 + $0x68] sm:$0xff] }
   0x8   :  { %421 = vmatpush.bf16.msra.mxu1 %v769_v18  ;;  %873 = vmatpush.bf16.msra.mxu3 %v769_v18  ;;  %v768_v21 = vld [vmem:[%s1134_s3 + $0x30] sm:$0xff]  ;;  %v767_v22 = vld [vmem:[%s1134_s3 + $0x28] sm:$0xff]  ;;  %v766_v23 = vld [vmem:[%s1134_s3 + $0x20] sm:$0xff] }
   0x9   :  { %v765_v24 = vld [vmem:[%s1134_s3 + $0x18] sm:$0xff]  ;;  %v744_v25 = vld [vmem:[%s1133_s0 + $0x30] sm:$0xff]  ;;  %v763_v28 = vld [vmem:[%s1134_s3 + $0x8] sm:$0xff] }
   0xa   :  { %218 = vmatpush.bf16.msra.mxu0 %v759_v2  ;;  %867 = vmatpush.bf16.msra.mxu2 %v759_v2  ;;  %v752_v26 = vld [vmem:[%s1133_s0 + $0x70] sm:$0xff]  ;;  %v762_v29 = vld [vmem:[%s1134_s3] sm:$0xff]  ;;  %v745_v30 = vld [vmem:[%s1133_s0 + $0x38] sm:$0xff] }
   0xb   :  { %v764_v27 = vld [vmem:[%s1134_s3 + $0x10] sm:$0xff]  ;;  %v753_v31 = vld [vmem:[%s1133_s0 + $0x78] sm:$0xff]  ;;  %v1012_v33 = vld [vmem:[%s1132_s2] ss:$0 sm:$0xff] }
   0xc   :  { %422 = vmatpush.bf16.msra.mxu1 %v768_v21  ;;  %874 = vmatpush.bf16.msra.mxu3 %v768_v21 }
   0xe   :  { %219 = vmatpush.bf16.msra.mxu0 %v758_v3  ;;  %868 = vmatpush.bf16.msra.mxu2 %v758_v3 }
  0x10   :  { %423 = vmatpush.bf16.msra.mxu1 %v767_v22  ;;  %875 = vmatpush.bf16.msra.mxu3 %v767_v22 }
  0x12   :  { %220 = vmatpush.bf16.msra.mxu0 %v757_v4  ;;  %869 = vmatpush.bf16.msra.mxu2 %v757_v4 }
  0x14   :  { %424 = vmatpush.bf16.msra.mxu1 %v766_v23  ;;  %876 = vmatpush.bf16.msra.mxu3 %v766_v23 }
  0x16   :  { %221 = vmatpush.bf16.msra.mxu0 %v756_v5  ;;  %870 = vmatpush.bf16.msra.mxu2 %v756_v5 }
  0x18   :  { %425 = vmatpush.bf16.msra.mxu1 %v765_v24  ;;  %877 = vmatpush.bf16.msra.mxu3 %v765_v24 }
  0x1a   :  { %222 = vmatpush.bf16.msra.mxu0 %v755_v6  ;;  %871 = vmatpush.bf16.msra.mxu2 %v755_v6 }
  0x1c   :  { %426 = vmatpush.bf16.msra.mxu1 %v764_v27  ;;  %878 = vmatpush.bf16.msra.mxu3 %v764_v27 }
  0x1e   :  { %223 = vmatpush.bf16.msra.mxu0 %v754_v7  ;;  %872 = vmatpush.bf16.msra.mxu2 %v754_v7 }
  0x20   :  { %427 = vmatpush.bf16.msra.mxu1 %v763_v28  ;;  %879 = vmatpush.bf16.msra.mxu3 %v763_v28 }
  0x21   :  { %224 = vmatmul.bf16.vlgmr.msra.gmra.mxu0 %v738_v8  ;;  %264 = vmatmul.bf16.vlgmr.msra.gmra.mxu2 %v746_v9 }
  0x24   :  { %428 = vmatpush.bf16.msra.mxu1 %v762_v29  ;;  %880 = vmatpush.bf16.msra.mxu3 %v762_v29 }
  0x31   :  { %229 = vmatmul.bf16.gmra.mxu0 %v739_v10  ;;  %269 = vmatmul.bf16.gmra.mxu2 %v747_v11 }
  0x41   :  { %234 = vmatmul.bf16.gmra.mxu0 %v740_v12  ;;  %274 = vmatmul.bf16.gmra.mxu2 %v748_v13 }
  0x51   :  { %239 = vmatmul.bf16.gmra.mxu0 %v741_v14  ;;  %279 = vmatmul.bf16.gmra.mxu2 %v749_v15 }
  0x61   :  { %244 = vmatmul.bf16.gmra.mxu0 %v742_v16  ;;  %284 = vmatmul.bf16.gmra.mxu2 %v750_v17 }
  0x71   :  { %249 = vmatmul.bf16.gmra.mxu0 %v743_v19  ;;  %289 = vmatmul.bf16.gmra.mxu2 %v751_v20 }
  0x81   :  { %254 = vmatmul.bf16.gmra.mxu0 %v744_v25  ;;  %294 = vmatmul.bf16.gmra.mxu2 %v752_v26 }
  0x91   :  { %259 = vmatmul.bf16.gmra.mxu0 %v745_v30  ;;  %299 = vmatmul.bf16.gmra.mxu2 %v753_v31 }
  0x9e   :  { %v225_v32 = vpop.f32.mrf.mxu0 }
  0x9f   :  { %v226_v34 = vadd.f32 %v1012_v33, %v225_v32 }
  0xa1   :  { %v305_v37 = vmax.f32 %v226_v34, 0.0 }
  0xa4   :  { %v265_v35 = vpop.f32.mrf.mxu2 }
  0xa5   :  { %v266_v40 = vadd.f32 %v1012_v33, %v265_v35 }
  0xa6   :  { %v227_v36 = vpop.f32.mrf.mxu0 }
  0xa7   :  { %v228_v38 = vadd.f32 %v1012_v33, %v227_v36  ;;  %v321_v45 = vmax.f32 %v266_v40, 0.0 }
  0xa9   :  { %v306_v39 = vmax.f32 %v228_v38, 0.0 }
  0xab   :  { %v337_v41 = vpack.c.bf16 %v306_v39, %v305_v37 }
  0xac   :  { %v267_v42 = vpop.f32.mrf.mxu2 }
  0xad   :  { %v268_v43 = vadd.f32 %v1012_v33, %v267_v42  ;;  %429 = vmatmul.bf16.vlgmr.msra.gmra.mxu1 %v337_v41 }
  0xae   :  { %v230_v44 = vpop.f32.mrf.mxu0 }
  0xaf   :  { %v322_v46 = vmax.f32 %v268_v43, 0.0  ;;  %v231_v48 = vadd.f32 %v1012_v33, %v230_v44 }
  0xb1   :  { %v345_v47 = vpack.c.bf16 %v322_v46, %v321_v45  ;;  %v307_v51 = vmax.f32 %v231_v48, 0.0 }
  0xb3   :  { %469 = vmatmul.bf16.vlgmr.msra.gmra.mxu3 %v345_v47 }
  0xb4   :  { %v270_v49 = vpop.f32.mrf.mxu2 }
  0xb5   :  { %v271_v54 = vadd.f32 %v1012_v33, %v270_v49 }
  0xb6   :  { %v232_v50 = vpop.f32.mrf.mxu0 }
  0xb7   :  { %v233_v52 = vadd.f32 %v1012_v33, %v232_v50  ;;  %v323_v59 = vmax.f32 %v271_v54, 0.0 }
  0xb9   :  { %v308_v53 = vmax.f32 %v233_v52, 0.0 }
  0xbb   :  { %v338_v55 = vpack.c.bf16 %v308_v53, %v307_v51 }
  0xbc   :  { %v272_v56 = vpop.f32.mrf.mxu2 }
  0xbd   :  { %v273_v57 = vadd.f32 %v1012_v33, %v272_v56  ;;  %434 = vmatmul.bf16.gmra.mxu1 %v338_v55 }
  0xbe   :  { %v235_v58 = vpop.f32.mrf.mxu0 }
  0xbf   :  { %v324_v60 = vmax.f32 %v273_v57, 0.0  ;;  %v236_v62 = vadd.f32 %v1012_v33, %v235_v58 }
  0xc1   :  { %v346_v61 = vpack.c.bf16 %v324_v60, %v323_v59  ;;  %v309_v1 = vmax.f32 %v236_v62, 0.0 }
  0xc3   :  { %474 = vmatmul.bf16.gmra.mxu3 %v346_v61 }
  0xc4   :  { %v275_v63 = vpop.f32.mrf.mxu2 }
  0xc5   :  { %v276_v4 = vadd.f32 %v1012_v33, %v275_v63 }
  0xc6   :  { %v237_v0 = vpop.f32.mrf.mxu0 }
  0xc7   :  { %v238_v2 = vadd.f32 %v1012_v33, %v237_v0  ;;  %v325_v9 = vmax.f32 %v276_v4, 0.0 }
  0xc9   :  { %v310_v3 = vmax.f32 %v238_v2, 0.0 }
  0xcb   :  { %v339_v5 = vpack.c.bf16 %v310_v3, %v309_v1 }
  0xcc   :  { %v277_v6 = vpop.f32.mrf.mxu2 }
  0xcd   :  { %v278_v7 = vadd.f32 %v1012_v33, %v277_v6  ;;  %439 = vmatmul.bf16.gmra.mxu1 %v339_v5 }
  0xce   :  { %v240_v8 = vpop.f32.mrf.mxu0 }
  0xcf   :  { %v326_v10 = vmax.f32 %v278_v7, 0.0  ;;  %v241_v12 = vadd.f32 %v1012_v33, %v240_v8 }
  0xd1   :  { %v347_v11 = vpack.c.bf16 %v326_v10, %v325_v9  ;;  %v311_v15 = vmax.f32 %v241_v12, 0.0 }
  0xd3   :  { %479 = vmatmul.bf16.gmra.mxu3 %v347_v11 }
  0xd4   :  { %v280_v13 = vpop.f32.mrf.mxu2 }
  0xd5   :  { %v281_v18 = vadd.f32 %v1012_v33, %v280_v13 }
  0xd6   :  { %v242_v14 = vpop.f32.mrf.mxu0 }
  0xd7   :  { %v243_v16 = vadd.f32 %v1012_v33, %v242_v14  ;;  %v327_v23 = vmax.f32 %v281_v18, 0.0 }
  0xd9   :  { %v312_v17 = vmax.f32 %v243_v16, 0.0 }
  0xdb   :  { %v340_v19 = vpack.c.bf16 %v312_v17, %v311_v15 }
  0xdc   :  { %v282_v20 = vpop.f32.mrf.mxu2 }
  0xdd   :  { %v283_v21 = vadd.f32 %v1012_v33, %v282_v20  ;;  %444 = vmatmul.bf16.gmra.mxu1 %v340_v19  ;;  %v1049_v19 = vld [vmem:[%s1135_s4] ss:$0 sm:$0xff] }
  0xde   :  { %v245_v22 = vpop.f32.mrf.mxu0 }
  0xdf   :  { %v328_v24 = vmax.f32 %v283_v21, 0.0  ;;  %v246_v26 = vadd.f32 %v1012_v33, %v245_v22 }
  0xe1   :  { %v348_v25 = vpack.c.bf16 %v328_v24, %v327_v23  ;;  %v313_v29 = vmax.f32 %v246_v26, 0.0 }
  0xe3   :  { %484 = vmatmul.bf16.gmra.mxu3 %v348_v25 }
  0xe4   :  { %v285_v27 = vpop.f32.mrf.mxu2 }
  0xe5   :  { %v286_v32 = vadd.f32 %v1012_v33, %v285_v27 }
  0xe6   :  { %v247_v28 = vpop.f32.mrf.mxu0 }
  0xe7   :  { %v248_v30 = vadd.f32 %v1012_v33, %v247_v28  ;;  %v329_v38 = vmax.f32 %v286_v32, 0.0 }
  0xe9   :  { %v314_v31 = vmax.f32 %v248_v30, 0.0 }
  0xeb   :  { %v341_v34 = vpack.c.bf16 %v314_v31, %v313_v29 }
  0xec   :  { %v287_v35 = vpop.f32.mrf.mxu2 }
  0xed   :  { %v288_v36 = vadd.f32 %v1012_v33, %v287_v35  ;;  %449 = vmatmul.bf16.gmra.mxu1 %v341_v34 }
  0xee   :  { %v250_v37 = vpop.f32.mrf.mxu0 }
  0xef   :  { %v330_v39 = vmax.f32 %v288_v36, 0.0  ;;  %v251_v41 = vadd.f32 %v1012_v33, %v250_v37 }
  0xf1   :  { %v349_v40 = vpack.c.bf16 %v330_v39, %v329_v38  ;;  %v315_v44 = vmax.f32 %v251_v41, 0.0 }
  0xf3   :  { %489 = vmatmul.bf16.gmra.mxu3 %v349_v40 }
  0xf4   :  { %v290_v42 = vpop.f32.mrf.mxu2 }
  0xf5   :  { %v291_v47 = vadd.f32 %v1012_v33, %v290_v42 }
  0xf6   :  { %v252_v43 = vpop.f32.mrf.mxu0 }
  0xf7   :  { %v253_v45 = vadd.f32 %v1012_v33, %v252_v43  ;;  %v331_v52 = vmax.f32 %v291_v47, 0.0 }
  0xf9   :  { %v316_v46 = vmax.f32 %v253_v45, 0.0 }
  0xfb   :  { %v342_v48 = vpack.c.bf16 %v316_v46, %v315_v44 }
  0xfc   :  { %v292_v49 = vpop.f32.mrf.mxu2 }
  0xfd   :  { %v293_v50 = vadd.f32 %v1012_v33, %v292_v49  ;;  %454 = vmatmul.bf16.gmra.mxu1 %v342_v48 }
  0xfe   :  { %v255_v51 = vpop.f32.mrf.mxu0 }
  0xff   :  { %v332_v53 = vmax.f32 %v293_v50, 0.0  ;;  %v256_v55 = vadd.f32 %v1012_v33, %v255_v51 }
 0x101   :  { %v350_v54 = vpack.c.bf16 %v332_v53, %v331_v52  ;;  %v317_v58 = vmax.f32 %v256_v55, 0.0 }
 0x103   :  { %494 = vmatmul.bf16.gmra.mxu3 %v350_v54 }
 0x104   :  { %v295_v56 = vpop.f32.mrf.mxu2 }
 0x105   :  { %v296_v61 = vadd.f32 %v1012_v33, %v295_v56 }
 0x106   :  { %v257_v57 = vpop.f32.mrf.mxu0 }
 0x107   :  { %v258_v59 = vadd.f32 %v1012_v33, %v257_v57  ;;  %v333_v2 = vmax.f32 %v296_v61, 0.0 }
 0x109   :  { %v318_v60 = vmax.f32 %v258_v59, 0.0 }
 0x10b   :  { %v343_v62 = vpack.c.bf16 %v318_v60, %v317_v58 }
 0x10c   :  { %v297_v63 = vpop.f32.mrf.mxu2 }
 0x10d   :  { %v298_v0 = vadd.f32 %v1012_v33, %v297_v63  ;;  %459 = vmatmul.bf16.gmra.mxu1 %v343_v62 }
 0x10e   :  { %v260_v1 = vpop.f32.mrf.mxu0 }
 0x10f   :  { %v334_v3 = vmax.f32 %v298_v0, 0.0  ;;  %v261_v5 = vadd.f32 %v1012_v33, %v260_v1 }
 0x111   :  { %v351_v4 = vpack.c.bf16 %v334_v3, %v333_v2  ;;  %v319_v8 = vmax.f32 %v261_v5, 0.0 }
 0x113   :  { %499 = vmatmul.bf16.gmra.mxu3 %v351_v4 }
 0x114   :  { %v300_v6 = vpop.f32.mrf.mxu2 }
 0x115   :  { %v301_v11 = vadd.f32 %v1012_v33, %v300_v6 }
 0x116   :  { %v262_v7 = vpop.f32.mrf.mxu0 }
 0x117   :  { %v263_v9 = vadd.f32 %v1012_v33, %v262_v7  ;;  %v335_v15 = vmax.f32 %v301_v11, 0.0 }
 0x119   :  { %v320_v10 = vmax.f32 %v263_v9, 0.0 }
 0x11b   :  { %v344_v12 = vpack.c.bf16 %v320_v10, %v319_v8 }
 0x11c   :  { %v302_v13 = vpop.f32.mrf.mxu2 }
 0x11d   :  { %v303_v14 = vadd.f32 %v1012_v33, %v302_v13  ;;  %464 = vmatmul.bf16.gmra.mxu1 %v344_v12 }
 0x11f   :  { %v336_v16 = vmax.f32 %v303_v14, 0.0 }
 0x121   :  { %v352_v17 = vpack.c.bf16 %v336_v16, %v335_v15 }
 0x123   :  { %504 = vmatmul.bf16.gmra.mxu3 %v352_v17 }
 0x12a   :  { %v430_v18 = vpop.f32.mrf.mxu1 }
 0x12b   :  { %v431_v20 = vadd.f32 %v1049_v19, %v430_v18 }
 0x12d   :  { %v510_v23 = vmax.f32 %v431_v20, 0.0 }
 0x132   :  { %v432_v21 = vpop.f32.mrf.mxu1 }
 0x133   :  { %v433_v22 = vadd.f32 %v1049_v19, %v432_v21 }
 0x135   :  { %v511_v24 = vmax.f32 %v433_v22, 0.0 }
 0x136   :  { %v470_v25 = vpop.f32.mrf.mxu3 }
 0x137   :  { %v773_v33 = vpack.c.bf16 %v511_v24, %v510_v23  ;;  %v471_v27 = vadd.f32 %v1049_v19, %v470_v25 }
 0x139   :  { %774 = vst [vmem:[%s1136_s5] sm:$0xff] %v773_v33   ;;  %v526_v30 = vmax.f32 %v471_v27, 0.0 }
 0x13a   :  { %v435_v26 = vpop.f32.mrf.mxu1 }
 0x13b   :  { %v436_v31 = vadd.f32 %v1049_v19, %v435_v26 }
 0x13d   :  { %v512_v37 = vmax.f32 %v436_v31, 0.0 }
 0x13e   :  { %v472_v28 = vpop.f32.mrf.mxu3 }
 0x13f   :  { %v473_v29 = vadd.f32 %v1049_v19, %v472_v28 }
 0x141   :  { %v527_v32 = vmax.f32 %v473_v29, 0.0 }
 0x142   :  { %v437_v34 = vpop.f32.mrf.mxu1 }
 0x143   :  { %v813_v35 = vpack.c.bf16 %v527_v32, %v526_v30  ;;  %v438_v36 = vadd.f32 %v1049_v19, %v437_v34 }
 0x145   :  { %857 = vst [vmem:[%s1136_s5 + $0x40] sm:$0xff] %v813_v35   ;;  %v513_v38 = vmax.f32 %v438_v36, 0.0 }
 0x146   :  { %v475_v39 = vpop.f32.mrf.mxu3 }
 0x147   :  { %v778_v40 = vpack.c.bf16 %v513_v38, %v512_v37  ;;  %v476_v42 = vadd.f32 %v1049_v19, %v475_v39 }
 0x149   :  { %850 = vst [vmem:[%s1136_s5 + $0x8] sm:$0xff] %v778_v40   ;;  %v528_v45 = vmax.f32 %v476_v42, 0.0 }
 0x14a   :  { %v440_v41 = vpop.f32.mrf.mxu1 }
 0x14b   :  { %v441_v46 = vadd.f32 %v1049_v19, %v440_v41 }
 0x14d   :  { %v514_v51 = vmax.f32 %v441_v46, 0.0 }
 0x14e   :  { %v477_v43 = vpop.f32.mrf.mxu3 }
 0x14f   :  { %v478_v44 = vadd.f32 %v1049_v19, %v477_v43 }
 0x151   :  { %v529_v47 = vmax.f32 %v478_v44, 0.0 }
 0x152   :  { %v442_v48 = vpop.f32.mrf.mxu1 }
 0x153   :  { %v818_v49 = vpack.c.bf16 %v529_v47, %v528_v45  ;;  %v443_v50 = vadd.f32 %v1049_v19, %v442_v48 }
 0x155   :  { %858 = vst [vmem:[%s1136_s5 + $0x48] sm:$0xff] %v818_v49   ;;  %v515_v52 = vmax.f32 %v443_v50, 0.0 }
 0x156   :  { %v480_v53 = vpop.f32.mrf.mxu3 }
 0x157   :  { %v783_v54 = vpack.c.bf16 %v515_v52, %v514_v51  ;;  %v481_v56 = vadd.f32 %v1049_v19, %v480_v53 }
 0x159   :  { %851 = vst [vmem:[%s1136_s5 + $0x10] sm:$0xff] %v783_v54   ;;  %v530_v59 = vmax.f32 %v481_v56, 0.0 }
 0x15a   :  { %v445_v55 = vpop.f32.mrf.mxu1 }
 0x15b   :  { %v446_v60 = vadd.f32 %v1049_v19, %v445_v55 }
 0x15d   :  { %v516_v1 = vmax.f32 %v446_v60, 0.0 }
 0x15e   :  { %v482_v57 = vpop.f32.mrf.mxu3 }
 0x15f   :  { %v483_v58 = vadd.f32 %v1049_v19, %v482_v57 }
 0x161   :  { %v531_v61 = vmax.f32 %v483_v58, 0.0 }
 0x162   :  { %v447_v62 = vpop.f32.mrf.mxu1 }
 0x163   :  { %v823_v63 = vpack.c.bf16 %v531_v61, %v530_v59  ;;  %v448_v0 = vadd.f32 %v1049_v19, %v447_v62 }
 0x165   :  { %859 = vst [vmem:[%s1136_s5 + $0x50] sm:$0xff] %v823_v63   ;;  %v517_v2 = vmax.f32 %v448_v0, 0.0 }
 0x166   :  { %v485_v3 = vpop.f32.mrf.mxu3 }
 0x167   :  { %v788_v4 = vpack.c.bf16 %v517_v2, %v516_v1  ;;  %v486_v6 = vadd.f32 %v1049_v19, %v485_v3 }
 0x169   :  { %852 = vst [vmem:[%s1136_s5 + $0x18] sm:$0xff] %v788_v4   ;;  %v532_v9 = vmax.f32 %v486_v6, 0.0 }
 0x16a   :  { %v450_v5 = vpop.f32.mrf.mxu1 }
 0x16b   :  { %v451_v10 = vadd.f32 %v1049_v19, %v450_v5 }
 0x16d   :  { %v518_v15 = vmax.f32 %v451_v10, 0.0 }
 0x16e   :  { %v487_v7 = vpop.f32.mrf.mxu3 }
 0x16f   :  { %v488_v8 = vadd.f32 %v1049_v19, %v487_v7 }
 0x171   :  { %v533_v11 = vmax.f32 %v488_v8, 0.0 }
 0x172   :  { %v452_v12 = vpop.f32.mrf.mxu1 }
 0x173   :  { %v828_v13 = vpack.c.bf16 %v533_v11, %v532_v9  ;;  %v453_v14 = vadd.f32 %v1049_v19, %v452_v12 }
 0x175   :  { %860 = vst [vmem:[%s1136_s5 + $0x58] sm:$0xff] %v828_v13   ;;  %v519_v16 = vmax.f32 %v453_v14, 0.0 }
 0x176   :  { %v490_v17 = vpop.f32.mrf.mxu3 }
 0x177   :  { %v793_v18 = vpack.c.bf16 %v519_v16, %v518_v15  ;;  %v491_v21 = vadd.f32 %v1049_v19, %v490_v17 }
 0x179   :  { %853 = vst [vmem:[%s1136_s5 + $0x20] sm:$0xff] %v793_v18   ;;  %v534_v24 = vmax.f32 %v491_v21, 0.0 }
 0x17a   :  { %v455_v20 = vpop.f32.mrf.mxu1 }
 0x17b   :  { %v456_v25 = vadd.f32 %v1049_v19, %v455_v20 }
 0x17d   :  { %v520_v29 = vmax.f32 %v456_v25, 0.0 }
 0x17e   :  { %v492_v22 = vpop.f32.mrf.mxu3 }
 0x17f   :  { %v493_v23 = vadd.f32 %v1049_v19, %v492_v22 }
 0x181   :  { %v535_v33 = vmax.f32 %v493_v23, 0.0 }
 0x182   :  { %v457_v26 = vpop.f32.mrf.mxu1 }
 0x183   :  { %v833_v27 = vpack.c.bf16 %v535_v33, %v534_v24  ;;  %v458_v28 = vadd.f32 %v1049_v19, %v457_v26 }
 0x185   :  { %861 = vst [vmem:[%s1136_s5 + $0x60] sm:$0xff] %v833_v27   ;;  %v521_v30 = vmax.f32 %v458_v28, 0.0 }
 0x186   :  { %v495_v31 = vpop.f32.mrf.mxu3 }
 0x187   :  { %v798_v32 = vpack.c.bf16 %v521_v30, %v520_v29  ;;  %v496_v35 = vadd.f32 %v1049_v19, %v495_v31 }
 0x189   :  { %854 = vst [vmem:[%s1136_s5 + $0x28] sm:$0xff] %v798_v32   ;;  %v536_v38 = vmax.f32 %v496_v35, 0.0 }
 0x18a   :  { %v460_v34 = vpop.f32.mrf.mxu1 }
 0x18b   :  { %v461_v39 = vadd.f32 %v1049_v19, %v460_v34 }
 0x18d   :  { %v522_v44 = vmax.f32 %v461_v39, 0.0 }
 0x18e   :  { %v497_v36 = vpop.f32.mrf.mxu3 }
 0x18f   :  { %v498_v37 = vadd.f32 %v1049_v19, %v497_v36 }
 0x191   :  { %v537_v40 = vmax.f32 %v498_v37, 0.0 }
 0x192   :  { %v462_v41 = vpop.f32.mrf.mxu1 }
 0x193   :  { %v838_v42 = vpack.c.bf16 %v537_v40, %v536_v38  ;;  %v463_v43 = vadd.f32 %v1049_v19, %v462_v41 }
 0x195   :  { %862 = vst [vmem:[%s1136_s5 + $0x68] sm:$0xff] %v838_v42   ;;  %v523_v45 = vmax.f32 %v463_v43, 0.0 }
 0x196   :  { %v500_v46 = vpop.f32.mrf.mxu3 }
 0x197   :  { %v803_v47 = vpack.c.bf16 %v523_v45, %v522_v44  ;;  %v501_v49 = vadd.f32 %v1049_v19, %v500_v46 }
 0x199   :  { %855 = vst [vmem:[%s1136_s5 + $0x30] sm:$0xff] %v803_v47   ;;  %v538_v52 = vmax.f32 %v501_v49, 0.0 }
 0x19a   :  { %v465_v48 = vpop.f32.mrf.mxu1 }
 0x19b   :  { %v466_v53 = vadd.f32 %v1049_v19, %v465_v48 }
 0x19d   :  { %v524_v58 = vmax.f32 %v466_v53, 0.0 }
 0x19e   :  { %v502_v50 = vpop.f32.mrf.mxu3 }
 0x19f   :  { %v503_v51 = vadd.f32 %v1049_v19, %v502_v50 }
 0x1a1   :  { %v539_v54 = vmax.f32 %v503_v51, 0.0 }
 0x1a2   :  { %v467_v55 = vpop.f32.mrf.mxu1 }
 0x1a3   :  { %v843_v56 = vpack.c.bf16 %v539_v54, %v538_v52  ;;  %v468_v57 = vadd.f32 %v1049_v19, %v467_v55 }
 0x1a5   :  { %863 = vst [vmem:[%s1136_s5 + $0x70] sm:$0xff] %v843_v56   ;;  %v525_v59 = vmax.f32 %v468_v57, 0.0 }
 0x1a6   :  { %v505_v60 = vpop.f32.mrf.mxu3 }
 0x1a7   :  { %v808_v61 = vpack.c.bf16 %v525_v59, %v524_v58  ;;  %v506_v62 = vadd.f32 %v1049_v19, %v505_v60 }
 0x1a9   :  { %856 = vst [vmem:[%s1136_s5 + $0x38] sm:$0xff] %v808_v61   ;;  %v540_v1 = vmax.f32 %v506_v62, 0.0 }
 0x1ae   :  { %v507_v63 = vpop.f32.mrf.mxu3 }
 0x1af   :  { %v508_v0 = vadd.f32 %v1049_v19, %v507_v63 }
 0x1b1   :  { %v541_v2 = vmax.f32 %v508_v0, 0.0 }
 0x1b3   :  { %v848_v3 = vpack.c.bf16 %v541_v2, %v540_v1 }
 0x1b5   :  { %864 = vst [vmem:[%s1136_s5 + $0x78] sm:$0xff] %v848_v3  }

</bundles_post_ra>
